<compile_context>
chip_gen: v6e
topology: v6e:2x2x1
jax: 0.10.0
libtpu: 0.0.40
codegen_flags: <defaults>
</compile_context>

<pallas_src>
import jax
import jax.numpy as jnp
from jax import lax
from jax.experimental import pallas as pl
from jax.experimental.pallas import tpu as pltpu


def _music_rnn_kernel(x_ref, h0_ref, wih_ref, whh_ref, whead_ref, bhead_ref,
                      head_ref, hid_ref):
    """Shapes (TBp = T*Bp, Bp = sublane-padded batch, Ppad = lane-padded P+1):
       x_ref:     (TBp, F)    f32   inputs, seq-major, flattened over (T, Bp)
       h0_ref:    (1, Bp, H)  f32   initial hidden state (padded rows are zero)
       wih_ref:   (F, H)      f32   W_ih^T (consumed by the VPU)
       whh_ref:   (H, H)      bf16  W_hh^T (MXU, held stationary across T)
       whead_ref: (H, Ppad)   bf16  [W_note^T | W_dur^T | zero pad]
       bhead_ref: (1, Ppad)   f32   [b_note   | b_dur   | zero pad]
       head_ref:  (TBp, Ppad) f32   fused head output (lane-dense)
       hid_ref:   (1, Bp, H)  f32   final hidden state
    """
    TBp = x_ref.shape[0]
    F = x_ref.shape[1]
    Bp = h0_ref.shape[1]
    T = TBp // Bp

    # 1) Input projection on the VPU: xp = sum_f x[:, f] * W_ih^T[f, :].
    #    K = F = 2 would waste an MXU pass; two broadcast multiply-adds keep
    #    the MXU free for the recurrence.  Off the serial chain.
    xp = x_ref[:, 0:1] * wih_ref[0:1, :]                        # (TBp, H) f32
    for f in range(1, F):
        xp = xp + x_ref[:, f:f + 1] * wih_ref[f:f + 1, :]

    whh = whh_ref[...]                                          # (H, H) bf16

    # 2) Recurrence.  h is loop-carried in vregs; T is small and static so the
    #    loop is fully unrolled and the scheduler sees the whole serial chain.
    #    whh is loop-invariant -> single stationary MXU RHS.  Per-step hidden
    #    states are collected in registers (no VMEM scratch, no masked stores).
    h = h0_ref[0]                                               # (Bp, H) f32
    hs = []
    for t in range(T):
        pre = xp[t * Bp:(t + 1) * Bp, :] + jnp.dot(
            h.astype(jnp.bfloat16), whh, preferred_element_type=jnp.float32)
        h = jnp.tanh(pre)                                       # (Bp, H) f32
        hs.append(h)
    hid_ref[0] = h

    # 3) Fused, lane-padded heads: one (TBp, H) @ (H, Ppad) matmul with the
    #    bias folded in; single unmasked, lane-dense output store.
    hs_all = jnp.concatenate(hs, axis=0)                        # (TBp, H) f32
    head_ref[...] = (jnp.dot(hs_all.astype(jnp.bfloat16), whead_ref[...],
                             preferred_element_type=jnp.float32)
                     + bhead_ref[...])


def music_rnn_forward(x, h0, w_ih, w_hh, w_note, b_note, w_dur, b_dur):
    """x: (T, B, F) float32; h0: (L=1, B, H); weights in PyTorch (out, in) layout.
       Returns (note_logits (T,B,P), duration_pred (T,B,1), hidden (1,B,H))."""
    T, B, F = x.shape
    H = w_hh.shape[0]
    P = w_note.shape[0]
    # note head (P) + duration head (1), lane-padded to a multiple of 128
    Ppad = ((P + 1 + 127) // 128) * 128
    # batch padded to the f32 sublane count so each step is one aligned vreg
    Bp = max(8, ((B + 7) // 8) * 8)

    # TODO(synk): only num_layers == 1 is implemented (module default).

    # One-time weight prep (outside the kernel): transpose to (in, out),
    # fuse note + duration heads, zero-pad lanes, cast MXU weights to bf16.
    w_ih_t = jnp.asarray(w_ih.T, jnp.float32)                   # (F, H)  VPU
    w_hh_t = jnp.asarray(w_hh.T, jnp.bfloat16)                  # (H, H)  MXU
    w_head = jnp.concatenate(
        [jnp.asarray(w_note.T, jnp.float32),
         jnp.asarray(w_dur.T, jnp.float32),
         jnp.zeros((H, Ppad - P - 1), jnp.float32)],
        axis=1).astype(jnp.bfloat16)                            # (H, Ppad)
    b_head = jnp.concatenate(
        [jnp.asarray(b_note, jnp.float32),
         jnp.asarray(b_dur, jnp.float32),
         jnp.zeros((Ppad - P - 1,), jnp.float32)]).reshape(1, Ppad)

    # Pad batch to Bp with zero rows; pad rows stay exactly zero through the
    # recurrence (tanh(0 + 0@W) = 0) and are sliced off below.
    x_pad = jnp.zeros((T, Bp, F), jnp.float32).at[:, :B, :].set(
        jnp.asarray(x, jnp.float32))
    h0_pad = jnp.zeros((1, Bp, H), jnp.float32).at[:, :B, :].set(
        jnp.asarray(h0, jnp.float32))
    x_flat = x_pad.reshape(T * Bp, F)                           # seq-major flat

    vmem = pl.BlockSpec(memory_space=pltpu.MemorySpace.VMEM)
    out_shape = (
        jax.ShapeDtypeStruct((T * Bp, Ppad), jnp.float32),      # fused heads
        jax.ShapeDtypeStruct((1, Bp, H), jnp.float32),          # final hidden
    )

    head_out, hidden = pl.pallas_call(
        _music_rnn_kernel,
        out_shape=out_shape,
        in_specs=[vmem] * 6,
        out_specs=(vmem, vmem),
    )(x_flat, h0_pad, w_ih_t, w_hh_t, w_head, b_head)

    head_out = head_out.reshape(T, Bp, Ppad)
    note_logits = head_out[:, :B, :P]                           # (T, B, P)
    duration_pred = head_out[:, :B, P:P + 1]                    # (T, B, 1)
    hidden = hidden[:, :B, :]                                   # (1, B, H)
    return note_logits, duration_pred, hidden


def music_rnn_reference(x, h0, w_ih, w_hh, w_note, b_note, w_dur, b_dur):
    """Pure-JAX f32 reference mirroring torch.nn.RNN(tanh, bias=False) + heads."""
    def step(h, x_t):
        h_new = jnp.tanh(x_t @ w_ih.T + h @ w_hh.T)
        return h_new, h_new

    h_last, rnn_out = lax.scan(step, h0[0], x)                  # rnn_out (T,B,H)
    note_logits = rnn_out @ w_note.T + b_note
    duration_pred = rnn_out @ w_dur.T + b_dur
    return note_logits, duration_pred, h_last[None]


if __name__ == "__main__":
    # Small shapes consistent with MusicRNN defaults
    T, B = 8, 2                # seq len, batch
    F = 2                      # num_features
    H = 128                    # hidden_size (module default, lane-aligned)
    P = 129                    # num_pitches
    L = 1                      # num_layers

    key = jax.random.PRNGKey(0)
    ks = jax.random.split(key, 7)
    bound = 1.0 / jnp.sqrt(H)

    x = jax.random.normal(ks[0], (T, B, F), jnp.float32)
    h0 = jnp.zeros((L, B, H), jnp.float32)

    # deterministic synthetic params (PyTorch (out, in) layout)
    w_ih = jax.random.uniform(ks[1], (H, F), jnp.float32, -bound, bound)
    w_hh = jax.random.uniform(ks[2], (H, H), jnp.float32, -bound, bound)
    w_note = jax.random.uniform(ks[3], (P, H), jnp.float32, -bound, bound)
    b_note = jax.random.uniform(ks[4], (P,), jnp.float32, -bound, bound)
    w_dur = jax.random.uniform(ks[5], (1, H), jnp.float32, -bound, bound)
    b_dur = jax.random.uniform(ks[6], (1,), jnp.float32, -bound, bound)

    note_logits, duration_pred, hidden = music_rnn_forward(
        x, h0, w_ih, w_hh, w_note, b_note, w_dur, b_dur)
    jax.block_until_ready((note_logits, duration_pred, hidden))

    # sanity check against pure-f32 reference (kernel feeds the MXU bf16
    # operands with f32 accumulation, hence the slightly looser tolerance)
    ref_note, ref_dur, ref_hid = music_rnn_reference(
        x, h0, w_ih, w_hh, w_note, b_note, w_dur, b_dur)
    assert note_logits.shape == (T, B, P)
    assert duration_pred.shape == (T, B, 1)
    assert hidden.shape == (L, B, H)
    assert jnp.allclose(note_logits, ref_note, atol=2e-2, rtol=2e-2)
    assert jnp.allclose(duration_pred, ref_dur, atol=2e-2, rtol=2e-2)
    assert jnp.allclose(hidden, ref_hid, atol=2e-2, rtol=2e-2)

    print("KERNEL_OK")
</pallas_src>

<mosaic_0001>
module attributes {stable_mosaic.version = 11 : i64} {
  func.func @_music_rnn_kernel(%arg0: memref<64x2xf32, #tpu.memory_space<vmem>>, %arg1: memref<1x8x128xf32, #tpu.memory_space<vmem>>, %arg2: memref<2x128xf32, #tpu.memory_space<vmem>>, %arg3: memref<128x128xbf16, #tpu.memory_space<vmem>>, %arg4: memref<128x256xbf16, #tpu.memory_space<vmem>>, %arg5: memref<1x256xf32, #tpu.memory_space<vmem>>, %arg6: memref<64x256xf32, #tpu.memory_space<vmem>>, %arg7: memref<1x8x128xf32, #tpu.memory_space<vmem>>) attributes {dimension_semantics = [], scalar_prefetch = 0 : i64, scratch_operands = 0 : i64, tpu.core_type = #tpu.core_type<tc>} {
    %c0 = arith.constant 0 : index
    %c0_0 = arith.constant 0 : index
    %0 = vector.load %arg0[%c0, %c0_0] : memref<64x2xf32, #tpu.memory_space<vmem>>, vector<64x1xf32>
    %c0_1 = arith.constant 0 : index
    %c0_2 = arith.constant 0 : index
    %1 = vector.load %arg2[%c0_1, %c0_2] : memref<2x128xf32, #tpu.memory_space<vmem>>, vector<1x128xf32>
    %2 = vector.broadcast %0 : vector<64x1xf32> to vector<64x128xf32>
    %3 = vector.broadcast %1 : vector<1x128xf32> to vector<64x128xf32>
    %4 = arith.mulf %2, %3 : vector<64x128xf32>
    %c0_3 = arith.constant 0 : index
    %c1 = arith.constant 1 : index
    %5 = vector.load %arg0[%c0_3, %c1] : memref<64x2xf32, #tpu.memory_space<vmem>>, vector<64x1xf32>
    %c1_4 = arith.constant 1 : index
    %c0_5 = arith.constant 0 : index
    %6 = vector.load %arg2[%c1_4, %c0_5] : memref<2x128xf32, #tpu.memory_space<vmem>>, vector<1x128xf32>
    %7 = vector.broadcast %5 : vector<64x1xf32> to vector<64x128xf32>
    %8 = vector.broadcast %6 : vector<1x128xf32> to vector<64x128xf32>
    %9 = arith.mulf %7, %8 : vector<64x128xf32>
    %10 = arith.addf %4, %9 : vector<64x128xf32>
    %c0_6 = arith.constant 0 : index
    %c0_7 = arith.constant 0 : index
    %11 = vector.load %arg3[%c0_6, %c0_7] : memref<128x128xbf16, #tpu.memory_space<vmem>>, vector<128x128xbf16>
    %c0_8 = arith.constant 0 : index
    %c0_9 = arith.constant 0 : index
    %c0_10 = arith.constant 0 : index
    %12 = vector.load %arg1[%c0_8, %c0_9, %c0_10] : memref<1x8x128xf32, #tpu.memory_space<vmem>>, vector<1x8x128xf32>
    %13 = vector.shape_cast %12 : vector<1x8x128xf32> to vector<8x128xf32>
    %14 = vector.extract_strided_slice %10 {offsets = [0, 0], sizes = [8, 128], strides = [1, 1]} : vector<64x128xf32> to vector<8x128xf32>
    %15 = arith.truncf %13 : vector<8x128xf32> to vector<8x128xbf16>
    %cst = arith.constant dense<0.000000e+00> : vector<8x128xf32>
    %16 = tpu.matmul %15, %11, %cst {dimension_numbers = #tpu.dot_dimension_numbers<[1], [0], [0], [1], [0, 0, 1, 1], [], []>} : vector<8x128xbf16>, vector<128x128xbf16>, vector<8x128xf32> -> vector<8x128xf32>
    %17 = arith.addf %14, %16 : vector<8x128xf32>
    %18 = math.tanh %17 : vector<8x128xf32>
    %19 = vector.extract_strided_slice %10 {offsets = [8, 0], sizes = [8, 128], strides = [1, 1]} : vector<64x128xf32> to vector<8x128xf32>
    %20 = arith.truncf %18 : vector<8x128xf32> to vector<8x128xbf16>
    %cst_11 = arith.constant dense<0.000000e+00> : vector<8x128xf32>
    %21 = tpu.matmul %20, %11, %cst_11 {dimension_numbers = #tpu.dot_dimension_numbers<[1], [0], [0], [1], [0, 0, 1, 1], [], []>} : vector<8x128xbf16>, vector<128x128xbf16>, vector<8x128xf32> -> vector<8x128xf32>
    %22 = arith.addf %19, %21 : vector<8x128xf32>
    %23 = math.tanh %22 : vector<8x128xf32>
    %24 = vector.extract_strided_slice %10 {offsets = [16, 0], sizes = [8, 128], strides = [1, 1]} : vector<64x128xf32> to vector<8x128xf32>
    %25 = arith.truncf %23 : vector<8x128xf32> to vector<8x128xbf16>
    %cst_12 = arith.constant dense<0.000000e+00> : vector<8x128xf32>
    %26 = tpu.matmul %25, %11, %cst_12 {dimension_numbers = #tpu.dot_dimension_numbers<[1], [0], [0], [1], [0, 0, 1, 1], [], []>} : vector<8x128xbf16>, vector<128x128xbf16>, vector<8x128xf32> -> vector<8x128xf32>
    %27 = arith.addf %24, %26 : vector<8x128xf32>
    %28 = math.tanh %27 : vector<8x128xf32>
    %29 = vector.extract_strided_slice %10 {offsets = [24, 0], sizes = [8, 128], strides = [1, 1]} : vector<64x128xf32> to vector<8x128xf32>
    %30 = arith.truncf %28 : vector<8x128xf32> to vector<8x128xbf16>
    %cst_13 = arith.constant dense<0.000000e+00> : vector<8x128xf32>
    %31 = tpu.matmul %30, %11, %cst_13 {dimension_numbers = #tpu.dot_dimension_numbers<[1], [0], [0], [1], [0, 0, 1, 1], [], []>} : vector<8x128xbf16>, vector<128x128xbf16>, vector<8x128xf32> -> vector<8x128xf32>
    %32 = arith.addf %29, %31 : vector<8x128xf32>
    %33 = math.tanh %32 : vector<8x128xf32>
    %34 = vector.extract_strided_slice %10 {offsets = [32, 0], sizes = [8, 128], strides = [1, 1]} : vector<64x128xf32> to vector<8x128xf32>
    %35 = arith.truncf %33 : vector<8x128xf32> to vector<8x128xbf16>
    %cst_14 = arith.constant dense<0.000000e+00> : vector<8x128xf32>
    %36 = tpu.matmul %35, %11, %cst_14 {dimension_numbers = #tpu.dot_dimension_numbers<[1], [0], [0], [1], [0, 0, 1, 1], [], []>} : vector<8x128xbf16>, vector<128x128xbf16>, vector<8x128xf32> -> vector<8x128xf32>
    %37 = arith.addf %34, %36 : vector<8x128xf32>
    %38 = math.tanh %37 : vector<8x128xf32>
    %39 = vector.extract_strided_slice %10 {offsets = [40, 0], sizes = [8, 128], strides = [1, 1]} : vector<64x128xf32> to vector<8x128xf32>
    %40 = arith.truncf %38 : vector<8x128xf32> to vector<8x128xbf16>
    %cst_15 = arith.constant dense<0.000000e+00> : vector<8x128xf32>
    %41 = tpu.matmul %40, %11, %cst_15 {dimension_numbers = #tpu.dot_dimension_numbers<[1], [0], [0], [1], [0, 0, 1, 1], [], []>} : vector<8x128xbf16>, vector<128x128xbf16>, vector<8x128xf32> -> vector<8x128xf32>
    %42 = arith.addf %39, %41 : vector<8x128xf32>
    %43 = math.tanh %42 : vector<8x128xf32>
    %44 = vector.extract_strided_slice %10 {offsets = [48, 0], sizes = [8, 128], strides = [1, 1]} : vector<64x128xf32> to vector<8x128xf32>
    %45 = arith.truncf %43 : vector<8x128xf32> to vector<8x128xbf16>
    %cst_16 = arith.constant dense<0.000000e+00> : vector<8x128xf32>
    %46 = tpu.matmul %45, %11, %cst_16 {dimension_numbers = #tpu.dot_dimension_numbers<[1], [0], [0], [1], [0, 0, 1, 1], [], []>} : vector<8x128xbf16>, vector<128x128xbf16>, vector<8x128xf32> -> vector<8x128xf32>
    %47 = arith.addf %44, %46 : vector<8x128xf32>
    %48 = math.tanh %47 : vector<8x128xf32>
    %49 = vector.extract_strided_slice %10 {offsets = [56, 0], sizes = [8, 128], strides = [1, 1]} : vector<64x128xf32> to vector<8x128xf32>
    %50 = arith.truncf %48 : vector<8x128xf32> to vector<8x128xbf16>
    %cst_17 = arith.constant dense<0.000000e+00> : vector<8x128xf32>
    %51 = tpu.matmul %50, %11, %cst_17 {dimension_numbers = #tpu.dot_dimension_numbers<[1], [0], [0], [1], [0, 0, 1, 1], [], []>} : vector<8x128xbf16>, vector<128x128xbf16>, vector<8x128xf32> -> vector<8x128xf32>
    %52 = arith.addf %49, %51 : vector<8x128xf32>
    %53 = math.tanh %52 : vector<8x128xf32>
    %c0_18 = arith.constant 0 : index
    %c0_19 = arith.constant 0 : index
    %c0_20 = arith.constant 0 : index
    %54 = vector.load %arg7[%c0_18, %c0_19, %c0_20] : memref<1x8x128xf32, #tpu.memory_space<vmem>>, vector<1x8x128xf32>
    %55 = vector.shape_cast %54 : vector<1x8x128xf32> to vector<8x128xf32>
    %56 = vector.shape_cast %53 : vector<8x128xf32> to vector<1x8x128xf32>
    tpu.vector_store %arg7[%c0_18, %c0_19, %c0_20], %56 {strides = array<i32>} : memref<1x8x128xf32, #tpu.memory_space<vmem>>, vector<1x8x128xf32>,
    %57 = tpu.concatenate %18, %23, %28, %33, %38, %43, %48, %53 in 0 : vector<8x128xf32>, vector<8x128xf32>, vector<8x128xf32>, vector<8x128xf32>, vector<8x128xf32>, vector<8x128xf32>, vector<8x128xf32>, vector<8x128xf32> -> vector<64x128xf32>
    %58 = arith.truncf %57 : vector<64x128xf32> to vector<64x128xbf16>
    %c0_21 = arith.constant 0 : index
    %c0_22 = arith.constant 0 : index
    %59 = vector.load %arg4[%c0_21, %c0_22] : memref<128x256xbf16, #tpu.memory_space<vmem>>, vector<128x256xbf16>
    %cst_23 = arith.constant dense<0.000000e+00> : vector<64x256xf32>
    %60 = tpu.matmul %58, %59, %cst_23 {dimension_numbers = #tpu.dot_dimension_numbers<[1], [0], [0], [1], [0, 0, 1, 1], [], []>} : vector<64x128xbf16>, vector<128x256xbf16>, vector<64x256xf32> -> vector<64x256xf32>
    %c0_24 = arith.constant 0 : index
    %c0_25 = arith.constant 0 : index
    %61 = vector.load %arg5[%c0_24, %c0_25] : memref<1x256xf32, #tpu.memory_space<vmem>>, vector<1x256xf32>
    %62 = vector.broadcast %61 : vector<1x256xf32> to vector<64x256xf32>
    %63 = arith.addf %60, %62 : vector<64x256xf32>
    %c0_26 = arith.constant 0 : index
    %c0_27 = arith.constant 0 : index
    %64 = vector.load %arg6[%c0_26, %c0_27] : memref<64x256xf32, #tpu.memory_space<vmem>>, vector<64x256xf32>
    tpu.vector_store %arg6[%c0_26, %c0_27], %63 {strides = array<i32>} : memref<64x256xf32, #tpu.memory_space<vmem>>, vector<64x256xf32>,
    return
  }
}

</mosaic_0001>

<bundles_post_ra>
// kernel: tpu_custom_call.1
= control target key start
LH: loop header
LB: loop body
LE: loop exit
PB: predicated region body
PF: predicated region fallthrough
CT: control target
= control target key end

     0   :  { %13 = vsyncpa [#allocation3], 0  ;;  %s1573_s0 = inlined_call_operand.vmem [shape: f32[64,2], index: 0, kind: input, shape index: {}]   ;;  %s1574_s1 = inlined_call_operand.hbm [shape: f32[1,8,128], index: 1, kind: input, shape index: {}]   ;;  %s1575_s2 = inlined_call_operand.vmem [shape: f32[2,128], index: 2, kind: input, shape index: {}]   ;;  %s1576_s3 = inlined_call_operand.vmem [shape: bf16[128,128], index: 3, kind: input, shape index: {}]   ;;  %s1577_s4 = inlined_call_operand.hbm [shape: bf16[128,256], index: 4, kind: input, shape index: {}]   ;;  %s1578_s5 = inlined_call_operand.vmem [shape: f32[1,256], index: 5, kind: input, shape index: {}]   ;;  %s1579_s6 = inlined_call_operand.hbm [shape: f32[64,256], index: 6, kind: output, shape index: {0}]   ;;  %s1580_s7 = inlined_call_operand.hbm [shape: f32[1,8,128], index: 7, kind: output, shape index: {1}]  }
   0x1   :  { %14 = vsyncpa [#allocation6], 0 }
   0x2   :  { %15 = vsyncpa [#allocation4], 0 }
   0x3   :  { %16 = vsyncpa [#allocation9], 0  ;;  %s1222_s24 = smov [#allocation2]   ;;  %s1223_s26 = smov [#allocation5]  }
   0x4   :  { %s25_s25 = sshll.u32 %s1222_s24, 4  ;;  %s38_s27 = sshll.u32 %s1223_s26, 4  ;;  %s26_s25 = int_to_ptr.vmem [resolvable:$true] %s25_s25  ;;  %s39_s27 = int_to_ptr.vmem [resolvable:$true] %s38_s27 }
   0x5   :  { %s1142_s28 = scalar_lea.vmem %s26_s25, 128  ;;  %p1147_p1 = scmp.lt.s32.totalorder %s26_s25, %s26_s25 }
   0x6   :  { %p1143_p0 = scmp.ne.s32.totalorder %s26_s25, %s1142_s28  ;;  %p1148_p2 = scmp.lt.s32.totalorder %s1142_s28, %s1142_s28 }
   0x8   :  { %p1149_p3 = por %p1148_p2, %p1147_p1 }
   0xa   :  { %p1150_p4 = pnand %p1149_p3, %p1143_p0 }
   0xc   :  { %1153 = shalt.err (!%p1150_p4)
}
   0xd   :  { %28 = dma.hbm_to_vmem [thread:$0]  %s1574_s1, 128, %s26_s25, [#allocation3]  }
   0xe   :  { %s1162_s8 = scalar_lea.vmem %s39_s27, 2048  ;;  %p1167_p6 = scmp.lt.s32.totalorder %s39_s27, %s39_s27 }
   0xf   :  { %p1163_p5 = scmp.ne.s32.totalorder %s39_s27, %s1162_s8  ;;  %p1168_p7 = scmp.lt.s32.totalorder %s1162_s8, %s1162_s8 }
  0x11   :  { %p1169_p8 = por %p1168_p7, %p1167_p6 }
  0x13   :  { %p1170_p9 = pnand %p1169_p8, %p1163_p5 }
  0x15   :  { %1173 = shalt.err (!%p1170_p9)
}
  0x16   :  { %s1224_s9 = smov 128   ;;  %s1225_s10 = smov 8  }
  0x17   :  { %44 = dma.hbm_to_vmem [thread:$0]  %s1577_s4, 2048, %s39_s27, [#allocation6], %s1224_s9, %s1224_s9, %s1225_s10  }
  0x18   :  { %1214 = dma.done.wait [#allocation3], 128  }
  0x19   :  { %1215 = vsyncadd [#allocation3], 4294967168 }
  0x1a   :  { %1216 = dma.done.wait [#allocation6], 2048  }
  0x1b   :  { %1217 = vsyncadd [#allocation6], 4294965248  ;;  %v1226_v0 = vmov 0.0   ;;  %vm1227_vm0 = vmmov 0   ;;  %v1228_v1 = vmov 0   ;;  %v1291_v2 = vld [vmem:[%s1576_s3 + $0x38] sm:$0xff]  }
  0x1c   :  { %909 = vmatprep.subr.bf16.mxu1 %v1226_v0  ;;  %925 = vmatprep.mubr.msk.bf16.mxu1 %vm1227_vm0, %v1226_v0  ;;  %v1297_v3 = vld [vmem:[%s1576_s3 + $0x30] sm:$0xff]   ;;  %v1306_v4 = vld [vmem:[%s1576_s3 + $0x28] sm:$0xff]   ;;  %v54_v6 = vld [vmem:[%s1573_s0] sm:$0xff]  ;;  %v1229_v9 = vmov 1  }
  0x1d   :  { %1083 = vset.pattern.permute.xlu1 %v1228_v1  ;;  %1081 = vset.pattern.permute.xlu0 %v1228_v1  ;;  %v55_v5 = vld [vmem:[%s1573_s0 + $0x8] sm:$0xff]  ;;  %v1321_v7 = vld [vmem:[%s1576_s3 + $0x20] sm:$0xff]   ;;  %v1329_v8 = vld [vmem:[%s1576_s3 + $0x18] sm:$0xff]  }
  0x1e   :  { %949 = vmatprep.subr.bf16.mxu0 %v1226_v0  ;;  %965 = vmatprep.mubr.msk.bf16.mxu0 %vm1227_vm0, %v1226_v0  ;;  %v56_v10 = vld [vmem:[%s1573_s0 + $0x10] sm:$0xff]  ;;  %v57_v12 = vld [vmem:[%s1573_s0 + $0x18] sm:$0xff]  ;;  %v1355_v13 = vld [vmem:[%s1576_s3 + $0x8] sm:$0xff]  }
  0x1f   :  { %910 = vmatpush3.bf16.msra.mxu1 %v1291_v2  ;;  %950 = vmatpush3.bf16.msra.mxu0 %v1291_v2  ;;  %v1342_v11 = vld [vmem:[%s1576_s3 + $0x10] sm:$0xff]   ;;  %v58_v14 = vld [vmem:[%s1573_s0 + $0x20] sm:$0xff]  ;;  %v59_v17 = vld [vmem:[%s1573_s0 + $0x28] sm:$0xff] }
  0x20   :  { %911 = vmatprep.subr.bf16.mxu1 %v1226_v0  ;;  %951 = vmatprep.subr.bf16.mxu0 %v1226_v0  ;;  %v1367_v15 = vld [vmem:[%s1576_s3] sm:$0xff]   ;;  %v60_v19 = vld [vmem:[%s1573_s0 + $0x30] sm:$0xff]  ;;  %v61_v20 = vld [vmem:[%s1573_s0 + $0x38] sm:$0xff] }
  0x21   :  { %70 = vperm.xlu1 %1083, %v55_v5   ;;  %65 = vperm.xlu0 %1081, %v54_v6   ;;  %v184_v16 = vld [vmem:[#allocation2] sm:$0xff] }
  0x22   :  { %v185_v18 = vpack.c.bf16 %v184_v16, %v184_v16  ;;  %v811_v23 = vld [vmem:[%s1575_s2] ss:$0 sm:$0xff]  ;;  %v812_v25 = vld [vmem:[%s1575_s2 + $0x1] ss:$0 sm:$0xff] }
  0x23   :  { %912 = vmatpush3.bf16.msra.mxu1 %v1297_v3  ;;  %952 = vmatpush3.bf16.msra.mxu0 %v1297_v3 }
  0x24   :  { %913 = vmatprep.subr.bf16.mxu1 %v1226_v0  ;;  %953 = vmatprep.subr.bf16.mxu0 %v1226_v0 }
  0x25   :  { %1084 = vset.pattern.permute.xlu1 %v1229_v9  ;;  %1082 = vset.pattern.permute.xlu0 %v1229_v9 }
  0x26   :  { %121 = vperm.xlu1 %1084, %v55_v5   ;;  %117 = vperm.xlu0 %1082, %v54_v6  }
  0x27   :  { %914 = vmatpush3.bf16.msra.mxu1 %v1306_v4  ;;  %954 = vmatpush3.bf16.msra.mxu0 %v1306_v4 }
  0x28   :  { %915 = vmatprep.subr.bf16.mxu1 %v1226_v0  ;;  %955 = vmatprep.subr.bf16.mxu0 %v1226_v0 }
  0x2a   :  { %1085 = vset.pattern.permute.xlu1 %v1228_v1  ;;  %125 = vperm.xlu0 %1082, %v56_v10  }
  0x2b   :  { %916 = vmatpush3.bf16.msra.mxu1 %v1321_v7  ;;  %956 = vmatpush3.bf16.msra.mxu0 %v1321_v7 }
  0x2c   :  { %917 = vmatprep.subr.bf16.mxu1 %v1226_v0  ;;  %957 = vmatprep.subr.bf16.mxu0 %v1226_v0 }
  0x2d   :  { %75 = vperm.xlu1 %1085, %v56_v10  }
  0x2e   :  { %129 = vperm.xlu0 %1082, %v57_v12  }
  0x2f   :  { %918 = vmatpush3.bf16.msra.mxu1 %v1329_v8  ;;  %958 = vmatpush3.bf16.msra.mxu0 %v1329_v8 }
  0x30   :  { %919 = vmatprep.subr.bf16.mxu1 %v1226_v0  ;;  %959 = vmatprep.subr.bf16.mxu0 %v1226_v0 }
  0x31   :  { %80 = vperm.xlu1 %1085, %v57_v12  }
  0x32   :  { %133 = vperm.xlu0 %1082, %v58_v14  }
  0x33   :  { %920 = vmatpush3.bf16.msra.mxu1 %v1342_v11  ;;  %960 = vmatpush3.bf16.msra.mxu0 %v1342_v11 }
  0x34   :  { %921 = vmatprep.subr.bf16.mxu1 %v1226_v0  ;;  %961 = vmatprep.subr.bf16.mxu0 %v1226_v0 }
  0x35   :  { %85 = vperm.xlu1 %1085, %v58_v14  }
  0x36   :  { %137 = vperm.xlu0 %1082, %v59_v17  }
  0x37   :  { %922 = vmatpush3.bf16.msra.mxu1 %v1355_v13  ;;  %962 = vmatpush3.bf16.msra.mxu0 %v1355_v13 }
  0x38   :  { %923 = vmatprep.subr.bf16.mxu1 %v1226_v0  ;;  %963 = vmatprep.subr.bf16.mxu0 %v1226_v0 }
  0x39   :  { %90 = vperm.xlu1 %1085, %v59_v17  }
  0x3a   :  { %141 = vperm.xlu0 %1082, %v60_v19  }
  0x3b   :  { %924 = vmatpush3.bf16.msra.mxu1 %v1367_v15  ;;  %964 = vmatpush3.bf16.msra.mxu0 %v1367_v15 }
  0x3c   :  { %929 = vmatprep.subr.bf16.mxu1 %v1226_v0  ;;  %989 = vmatprep.subr.bf16.mxu0 %v1226_v0 }
  0x3d   :  { %95 = vperm.xlu1 %1085, %v60_v19  }
  0x3e   :  { %926 = vmatmul.mubr.bf16.vlgmr.msra.gmra.mxu1 %v185_v18  ;;  %145 = vperm.xlu0 %1082, %v61_v20  }
  0x3f   :  { %930 = vmatpush3.bf16.msra.mxu1 %v1291_v2  ;;  %945 = vmatprep.mubr.msk.bf16.mxu1 %vm1227_vm0, %v1226_v0 }
  0x40   :  { %931 = vmatprep.subr.bf16.mxu1 %v1226_v0 }
  0x41   :  { %100 = vperm.xlu1 %1085, %v61_v20  }
  0x43   :  { %932 = vmatpush3.bf16.msra.mxu1 %v1297_v3 }
  0x44   :  { %933 = vmatprep.subr.bf16.mxu1 %v1226_v0 }
  0x47   :  { %934 = vmatpush3.bf16.msra.mxu1 %v1306_v4 }
  0x48   :  { %935 = vmatprep.subr.bf16.mxu1 %v1226_v0 }
  0x4b   :  { %936 = vmatpush3.bf16.msra.mxu1 %v1321_v7 }
  0x4c   :  { %937 = vmatprep.subr.bf16.mxu1 %v1226_v0 }
  0x4f   :  { %938 = vmatpush3.bf16.msra.mxu1 %v1329_v8 }
  0x50   :  { %939 = vmatprep.subr.bf16.mxu1 %v1226_v0 }
  0x53   :  { %940 = vmatpush3.bf16.msra.mxu1 %v1342_v11 }
  0x54   :  { %941 = vmatprep.subr.bf16.mxu1 %v1226_v0 }
  0x57   :  { %942 = vmatpush3.bf16.msra.mxu1 %v1355_v13 }
  0x58   :  { %943 = vmatprep.subr.bf16.mxu1 %v1226_v0 }
  0x5b   :  { %944 = vmatpush3.bf16.msra.mxu1 %v1367_v15 }
  0x5c   :  { %969 = vmatprep.subr.bf16.mxu1 %v1226_v0 }
  0x9c   :  { %v71_v21 = vpop.permute.xlu1 %70  ;;  %v66_v22 = vpop.permute.xlu0 %65 }
  0x9d   :  { %v108_v24 = vmul.f32 %v811_v23, %v71_v21  ;;  %v107_v60 = vmul.f32 %v811_v23, %v66_v22 }
  0xa1   :  { %v122_v26 = vpop.permute.xlu1 %121  ;;  %v118_v28 = vpop.permute.xlu0 %117 }
  0xa2   :  { %v153_v27 = vmul.f32 %v812_v25, %v122_v26  ;;  %v152_v61 = vmul.f32 %v812_v25, %v118_v28 }
  0xa4   :  { %v161_v29 = vadd.f32 %v153_v27, %v108_v24  ;;  %v160_v62 = vadd.f32 %v152_v61, %v107_v60 }
  0xa5   :  { %v126_v32 = vpop.permute.xlu0 %125 }
  0xa6   :  { %v154_v33 = vmul.f32 %v812_v25, %v126_v32 }
  0xa8   :  { %v76_v30 = vpop.permute.xlu1 %75 }
  0xa9   :  { %v109_v31 = vmul.f32 %v811_v23, %v76_v30  ;;  %v130_v37 = vpop.permute.xlu0 %129 }
  0xaa   :  { %v155_v38 = vmul.f32 %v812_v25, %v130_v37 }
  0xab   :  { %v1409_v35 = vadd.f32 %v154_v33, %v109_v31 }
  0xac   :  { %v81_v34 = vpop.permute.xlu1 %80 }
  0xad   :  { %v110_v36 = vmul.f32 %v811_v23, %v81_v34  ;;  %v134_v42 = vpop.permute.xlu0 %133 }
  0xae   :  { %v156_v43 = vmul.f32 %v812_v25, %v134_v42 }
  0xaf   :  { %v1411_v40 = vadd.f32 %v155_v38, %v110_v36 }
  0xb0   :  { %v86_v39 = vpop.permute.xlu1 %85 }
  0xb1   :  { %v111_v41 = vmul.f32 %v811_v23, %v86_v39  ;;  %v138_v47 = vpop.permute.xlu0 %137 }
  0xb2   :  { %v157_v48 = vmul.f32 %v812_v25, %v138_v47  ;;  %v1099_v47 = vld [vmem:[#allocation5 + $0x64] ss:$8 sps:$4 sm:$0xff]  }
  0xb3   :  { %v1413_v45 = vadd.f32 %v156_v43, %v111_v41 }
  0xb4   :  { %v91_v44 = vpop.permute.xlu1 %90 }
  0xb5   :  { %v112_v46 = vmul.f32 %v811_v23, %v91_v44  ;;  %v142_v52 = vpop.permute.xlu0 %141 }
  0xb6   :  { %v158_v53 = vmul.f32 %v812_v25, %v142_v52  ;;  %v1111_v52 = vld [vmem:[#allocation5 + $0x24] ss:$8 sps:$4 sm:$0xff]  }
  0xb7   :  { %v1415_v50 = vadd.f32 %v157_v48, %v112_v46  ;;  %v1094_v46 = vld [vmem:[#allocation5 + $0x70] ss:$8 sps:$4 sm:$0xff]   ;;  %v1105_v48 = vld [vmem:[#allocation5 + $0x44] ss:$8 sps:$4 sm:$0xff]  }
  0xb8   :  { %v96_v49 = vpop.permute.xlu1 %95 }
  0xb9   :  { %v113_v51 = vmul.f32 %v811_v23, %v96_v49  ;;  %v146_v57 = vpop.permute.xlu0 %145  ;;  %v1103_v49 = vld [vmem:[#allocation5 + $0x40] ss:$8 sps:$4 sm:$0xff]  }
  0xba   :  { %v159_v58 = vmul.f32 %v812_v25, %v146_v57  ;;  %v1117_v57 = vld [vmem:[#allocation5 + $0x4] ss:$8 sps:$4 sm:$0xff]  }
  0xbb   :  { %v1417_v55 = vadd.f32 %v158_v53, %v113_v51  ;;  %v1106_v51 = vld [vmem:[#allocation5 + $0x30] ss:$8 sps:$4 sm:$0xff]   ;;  %v1109_v53 = vld [vmem:[#allocation5 + $0x20] ss:$8 sps:$4 sm:$0xff]  }
  0xbc   :  { %v101_v54 = vpop.permute.xlu1 %100 }
  0xbd   :  { %v114_v56 = vmul.f32 %v811_v23, %v101_v54  ;;  %v1114_v54 = vld [vmem:[#allocation5 + $0x14] ss:$8 sps:$4 sm:$0xff]  }
  0xbf   :  { %v1419_v59 = vadd.f32 %v159_v58, %v114_v56  ;;  %v1112_v56 = vld [vmem:[#allocation5 + $0x10] ss:$8 sps:$4 sm:$0xff]   ;;  %v1115_v58 = vld [vmem:[#allocation5] ss:$8 sps:$4 sm:$0xff]  }
  0xfe   :  { %v268_v63 = vpop.f32.mrf.mxu1 }
  0xff   :  { %v274_v5 = vadd.f32 %v268_v63, %v160_v62 }
 0x100   :  { %v927_v6 = vpop.f32.mrf.mxu1 }
 0x101   :  { %1118 = vtanh.f32 %v274_v5 }
 0x102   :  { %v271_v9 = vpop.f32.mrf.mxu1 }
 0x104   :  { %v928_v10 = vpop.f32.mrf.mxu1 }
 0x10e   :  { %v1421_v12 = vpop.eup %1118 }
 0x10f   :  { %v276_v14 = vpack.c.bf16 %v1421_v12, %v1421_v12 }
 0x111   :  { %946 = vmatmul.mubr.bf16.vlgmr.msra.gmra.mxu1 %v276_v14 }
 0x112   :  { %970 = vmatpush3.bf16.msra.mxu1 %v1291_v2  ;;  %985 = vmatprep.mubr.msk.bf16.mxu1 %vm1227_vm0, %v1226_v0 }
 0x113   :  { %971 = vmatprep.subr.bf16.mxu1 %v1226_v0 }
 0x116   :  { %972 = vmatpush3.bf16.msra.mxu1 %v1297_v3 }
 0x117   :  { %973 = vmatprep.subr.bf16.mxu1 %v1226_v0 }
 0x11a   :  { %974 = vmatpush3.bf16.msra.mxu1 %v1306_v4 }
 0x11b   :  { %975 = vmatprep.subr.bf16.mxu1 %v1226_v0 }
 0x11e   :  { %976 = vmatpush3.bf16.msra.mxu1 %v1321_v7 }
 0x11f   :  { %977 = vmatprep.subr.bf16.mxu1 %v1226_v0 }
 0x122   :  { %978 = vmatpush3.bf16.msra.mxu1 %v1329_v8 }
 0x123   :  { %979 = vmatprep.subr.bf16.mxu1 %v1226_v0 }
 0x126   :  { %980 = vmatpush3.bf16.msra.mxu1 %v1342_v11 }
 0x127   :  { %981 = vmatprep.subr.bf16.mxu1 %v1226_v0 }
 0x12a   :  { %982 = vmatpush3.bf16.msra.mxu1 %v1355_v13 }
 0x12b   :  { %983 = vmatprep.subr.bf16.mxu1 %v1226_v0 }
 0x12e   :  { %984 = vmatpush3.bf16.msra.mxu1 %v1367_v15 }
 0x12f   :  { %1009 = vmatprep.subr.bf16.mxu1 %v1226_v0 }
 0x1d1   :  { %v311_v16 = vpop.f32.mrf.mxu1 }
 0x1d2   :  { %v317_v17 = vadd.f32 %v311_v16, %v161_v29  ;;  %v600_v16 = vlaneseq }
 0x1d3   :  { %v947_v18 = vpop.f32.mrf.mxu1 }
 0x1d4   :  { %1120 = vtanh.f32 %v317_v17  ;;  %v601_v17 = vshrl.u32 %v600_v16, 7 }
 0x1d5   :  { %v314_v19 = vpop.f32.mrf.mxu1 }
 0x1d6   :  { %v602_v18 = vsub.s32 0, %v601_v17  ;;  %v598_v19 = vld [vmem:[%s1578_s5] sm:$0x3]  ;;  %s1230_s5 = smov [#allocation8]  }
 0x1d7   :  { %v948_v20 = vpop.f32.mrf.mxu1  ;;  %s797_s21 = sshll.u32 %s1230_s5, 4  ;;  %s798_s21 = int_to_ptr.vmem [resolvable:$true] %s797_s21 }
 0x1d8   :  { %v606_v20 = vsub.s32 1, %v601_v17  ;;  %s1174_s22 = scalar_lea.vmem %s798_s21, 128  ;;  %p1179_p11 = scmp.lt.s32.totalorder %s798_s21, %s798_s21 }
 0x1d9   :  { %p1175_p10 = scmp.ne.s32.totalorder %s798_s21, %s1174_s22  ;;  %p1180_p12 = scmp.lt.s32.totalorder %s1174_s22, %s1174_s22 }
 0x1db   :  { %p1181_p13 = por %p1180_p12, %p1179_p11 }
 0x1dd   :  { %p1182_p0 = pnand %p1181_p13, %p1175_p10 }
 0x1e1   :  { %v1443_v21 = vpop.eup %1120 }
 0x1e2   :  { %v319_v22 = vpack.c.bf16 %v1443_v21, %v1443_v21  ;;  %v578_v60 = vpack.c.bf16 %v1443_v21, %v1421_v12  ;;  %v1546_v21 = vrot.slane %v598_v19, %v602_v18 }
 0x1e4   :  { %966 = vmatmul.mubr.bf16.vlgmr.msra.gmra.mxu0 %v319_v22 }
 0x1e5   :  { %990 = vmatpush3.bf16.msra.mxu0 %v1291_v2  ;;  %1005 = vmatprep.mubr.msk.bf16.mxu0 %vm1227_vm0, %v1226_v0 }
 0x1e6   :  { %991 = vmatprep.subr.bf16.mxu0 %v1226_v0 }
 0x1e9   :  { %992 = vmatpush3.bf16.msra.mxu0 %v1297_v3 }
 0x1ea   :  { %993 = vmatprep.subr.bf16.mxu0 %v1226_v0 }
 0x1ed   :  { %994 = vmatpush3.bf16.msra.mxu0 %v1306_v4 }
 0x1ee   :  { %995 = vmatprep.subr.bf16.mxu0 %v1226_v0 }
 0x1f1   :  { %996 = vmatpush3.bf16.msra.mxu0 %v1321_v7 }
 0x1f2   :  { %997 = vmatprep.subr.bf16.mxu0 %v1226_v0 }
 0x1f5   :  { %998 = vmatpush3.bf16.msra.mxu0 %v1329_v8 }
 0x1f6   :  { %999 = vmatprep.subr.bf16.mxu0 %v1226_v0 }
 0x1f9   :  { %1000 = vmatpush3.bf16.msra.mxu0 %v1342_v11 }
 0x1fa   :  { %1001 = vmatprep.subr.bf16.mxu0 %v1226_v0 }
 0x1fd   :  { %1002 = vmatpush3.bf16.msra.mxu0 %v1355_v13 }
 0x1fe   :  { %1003 = vmatprep.subr.bf16.mxu0 %v1226_v0 }
 0x201   :  { %1004 = vmatpush3.bf16.msra.mxu0 %v1367_v15 }
 0x202   :  { %1029 = vmatprep.subr.bf16.mxu0 %v1226_v0 }
 0x2a4   :  { %v354_v23 = vpop.f32.mrf.mxu0 }
 0x2a5   :  { %v360_v24 = vadd.f32 %v354_v23, %v1409_v35 }
 0x2a6   :  { %v967_v25 = vpop.f32.mrf.mxu0 }
 0x2a7   :  { %1122 = vtanh.f32 %v360_v24 }
 0x2a8   :  { %v357_v26 = vpop.f32.mrf.mxu0 }
 0x2aa   :  { %v968_v27 = vpop.f32.mrf.mxu0 }
 0x2b4   :  { %v1466_v28 = vpop.eup %1122 }
 0x2b5   :  { %v362_v29 = vpack.c.bf16 %v1466_v28, %v1466_v28 }
 0x2b7   :  { %986 = vmatmul.mubr.bf16.vlgmr.msra.gmra.mxu1 %v362_v29 }
 0x2b8   :  { %1010 = vmatpush3.bf16.msra.mxu1 %v1291_v2  ;;  %1025 = vmatprep.mubr.msk.bf16.mxu1 %vm1227_vm0, %v1226_v0 }
 0x2b9   :  { %1011 = vmatprep.subr.bf16.mxu1 %v1226_v0 }
 0x2bc   :  { %1012 = vmatpush3.bf16.msra.mxu1 %v1297_v3 }
 0x2bd   :  { %1013 = vmatprep.subr.bf16.mxu1 %v1226_v0 }
 0x2c0   :  { %1014 = vmatpush3.bf16.msra.mxu1 %v1306_v4 }
 0x2c1   :  { %1015 = vmatprep.subr.bf16.mxu1 %v1226_v0 }
 0x2c4   :  { %1016 = vmatpush3.bf16.msra.mxu1 %v1321_v7 }
 0x2c5   :  { %1017 = vmatprep.subr.bf16.mxu1 %v1226_v0 }
 0x2c8   :  { %1018 = vmatpush3.bf16.msra.mxu1 %v1329_v8 }
 0x2c9   :  { %1019 = vmatprep.subr.bf16.mxu1 %v1226_v0 }
 0x2cc   :  { %1020 = vmatpush3.bf16.msra.mxu1 %v1342_v11 }
 0x2cd   :  { %1021 = vmatprep.subr.bf16.mxu1 %v1226_v0 }
 0x2d0   :  { %1022 = vmatpush3.bf16.msra.mxu1 %v1355_v13 }
 0x2d1   :  { %1023 = vmatprep.subr.bf16.mxu1 %v1226_v0 }
 0x2d4   :  { %1024 = vmatpush3.bf16.msra.mxu1 %v1367_v15 }
 0x2d5   :  { %1049 = vmatprep.subr.bf16.mxu1 %v1226_v0 }
 0x377   :  { %v397_v30 = vpop.f32.mrf.mxu1 }
 0x378   :  { %v403_v31 = vadd.f32 %v397_v30, %v1411_v40 }
 0x379   :  { %v987_v32 = vpop.f32.mrf.mxu1 }
 0x37a   :  { %1124 = vtanh.f32 %v403_v31 }
 0x37b   :  { %v400_v33 = vpop.f32.mrf.mxu1 }
 0x37d   :  { %v988_v34 = vpop.f32.mrf.mxu1 }
 0x387   :  { %v1489_v35 = vpop.eup %1124 }
 0x388   :  { %v405_v36 = vpack.c.bf16 %v1489_v35, %v1489_v35  ;;  %v579_v61 = vpack.c.bf16 %v1489_v35, %v1466_v28 }
 0x38a   :  { %1006 = vmatmul.mubr.bf16.vlgmr.msra.gmra.mxu0 %v405_v36 }
 0x38b   :  { %1030 = vmatpush3.bf16.msra.mxu0 %v1291_v2  ;;  %1045 = vmatprep.mubr.msk.bf16.mxu0 %vm1227_vm0, %v1226_v0 }
 0x38c   :  { %1031 = vmatprep.subr.bf16.mxu0 %v1226_v0 }
 0x38f   :  { %1032 = vmatpush3.bf16.msra.mxu0 %v1297_v3 }
 0x390   :  { %1033 = vmatprep.subr.bf16.mxu0 %v1226_v0 }
 0x393   :  { %1034 = vmatpush3.bf16.msra.mxu0 %v1306_v4 }
 0x394   :  { %1035 = vmatprep.subr.bf16.mxu0 %v1226_v0 }
 0x397   :  { %1036 = vmatpush3.bf16.msra.mxu0 %v1321_v7 }
 0x398   :  { %1037 = vmatprep.subr.bf16.mxu0 %v1226_v0 }
 0x39b   :  { %1038 = vmatpush3.bf16.msra.mxu0 %v1329_v8 }
 0x39c   :  { %1039 = vmatprep.subr.bf16.mxu0 %v1226_v0 }
 0x39f   :  { %1040 = vmatpush3.bf16.msra.mxu0 %v1342_v11 }
 0x3a0   :  { %1041 = vmatprep.subr.bf16.mxu0 %v1226_v0 }
 0x3a3   :  { %1042 = vmatpush3.bf16.msra.mxu0 %v1355_v13 }
 0x3a4   :  { %1043 = vmatprep.subr.bf16.mxu0 %v1226_v0 }
 0x3a7   :  { %1044 = vmatpush3.bf16.msra.mxu0 %v1367_v15 }
 0x44a   :  { %v440_v37 = vpop.f32.mrf.mxu0 }
 0x44b   :  { %v446_v38 = vadd.f32 %v440_v37, %v1413_v45 }
 0x44c   :  { %v1007_v39 = vpop.f32.mrf.mxu0 }
 0x44d   :  { %1126 = vtanh.f32 %v446_v38 }
 0x44e   :  { %v443_v40 = vpop.f32.mrf.mxu0 }
 0x450   :  { %v1008_v41 = vpop.f32.mrf.mxu0 }
 0x45a   :  { %v1511_v42 = vpop.eup %1126 }
 0x45b   :  { %v448_v43 = vpack.c.bf16 %v1511_v42, %v1511_v42 }
 0x45d   :  { %1026 = vmatmul.mubr.bf16.vlgmr.msra.gmra.mxu1 %v448_v43 }
 0x45e   :  { %1050 = vmatpush3.bf16.msra.mxu1 %v1291_v2  ;;  %1065 = vmatprep.mubr.msk.bf16.mxu1 %vm1227_vm0, %v1226_v0  ;;  %v1096_v2 = vld [vmem:[#allocation5 + $0x74] ss:$8 sps:$4 sm:$0xff]  }
 0x45f   :  { %1051 = vmatprep.subr.bf16.mxu1 %v1226_v0  ;;  %690 = vmatprep.subr.bf16.mxu0 %v1096_v2 }
 0x462   :  { %1052 = vmatpush3.bf16.msra.mxu1 %v1297_v3 }
 0x463   :  { %1053 = vmatprep.subr.bf16.mxu1 %v1226_v0 }
 0x466   :  { %1054 = vmatpush3.bf16.msra.mxu1 %v1306_v4 }
 0x467   :  { %1055 = vmatprep.subr.bf16.mxu1 %v1226_v0 }
 0x46a   :  { %1056 = vmatpush3.bf16.msra.mxu1 %v1321_v7 }
 0x46b   :  { %1057 = vmatprep.subr.bf16.mxu1 %v1226_v0 }
 0x46e   :  { %1058 = vmatpush3.bf16.msra.mxu1 %v1329_v8 }
 0x46f   :  { %1059 = vmatprep.subr.bf16.mxu1 %v1226_v0 }
 0x472   :  { %1060 = vmatpush3.bf16.msra.mxu1 %v1342_v11 }
 0x473   :  { %1061 = vmatprep.subr.bf16.mxu1 %v1226_v0 }
 0x476   :  { %1062 = vmatpush3.bf16.msra.mxu1 %v1355_v13  ;;  %v1097_v13 = vld [vmem:[#allocation5 + $0x60] ss:$8 sps:$4 sm:$0xff]  }
 0x477   :  { %1063 = vmatprep.subr.bf16.mxu1 %v1226_v0  ;;  %v1102_v0 = vld [vmem:[#allocation5 + $0x54] ss:$8 sps:$4 sm:$0xff]  }
 0x47a   :  { %1064 = vmatpush3.bf16.msra.mxu1 %v1367_v15  ;;  %v1100_v15 = vld [vmem:[#allocation5 + $0x50] ss:$8 sps:$4 sm:$0xff]  }
 0x51d   :  { %v483_v3 = vpop.f32.mrf.mxu1 }
 0x51e   :  { %v489_v4 = vadd.f32 %v483_v3, %v1415_v50  ;;  %v1108_v50 = vld [vmem:[#allocation5 + $0x34] ss:$8 sps:$4 sm:$0xff]  }
 0x51f   :  { %v1027_v7 = vpop.f32.mrf.mxu1 }
 0x520   :  { %1128 = vtanh.f32 %v489_v4 }
 0x521   :  { %v486_v8 = vpop.f32.mrf.mxu1 }
 0x523   :  { %v1028_v44 = vpop.f32.mrf.mxu1 }
 0x52d   :  { %v1129_v45 = vpop.eup %1128 }
 0x52e   :  { %v491_v11 = vpack.c.bf16 %v1129_v45, %v1129_v45  ;;  %v580_v62 = vpack.c.bf16 %v1129_v45, %v1511_v42 }
 0x530   :  { %1046 = vmatmul.mubr.bf16.vlgmr.msra.gmra.mxu0 %v491_v11 }
 0x531   :  { %691 = vmatpush1.bf16.msra.mxu0 %v1094_v46  ;;  %722 = vmatprep.mubr.bf16.mxu0 %v1228_v1 }
 0x532   :  { %692 = vmatprep.subr.bf16.mxu0 %v1099_v47 }
 0x535   :  { %693 = vmatpush1.bf16.msra.mxu0 %v1097_v13 }
 0x536   :  { %694 = vmatprep.subr.bf16.mxu0 %v1102_v0 }
 0x539   :  { %695 = vmatpush1.bf16.msra.mxu0 %v1100_v15 }
 0x53a   :  { %696 = vmatprep.subr.bf16.mxu0 %v1105_v48 }
 0x53d   :  { %697 = vmatpush1.bf16.msra.mxu0 %v1103_v49 }
 0x53e   :  { %698 = vmatprep.subr.bf16.mxu0 %v1108_v50 }
 0x541   :  { %699 = vmatpush1.bf16.msra.mxu0 %v1106_v51 }
 0x542   :  { %700 = vmatprep.subr.bf16.mxu0 %v1111_v52 }
 0x545   :  { %701 = vmatpush1.bf16.msra.mxu0 %v1109_v53 }
 0x546   :  { %702 = vmatprep.subr.bf16.mxu0 %v1114_v54 }
 0x549   :  { %703 = vmatpush1.bf16.msra.mxu0 %v1112_v56 }
 0x54a   :  { %704 = vmatprep.subr.bf16.mxu0 %v1117_v57 }
 0x54d   :  { %705 = vmatpush1.bf16.msra.mxu0 %v1115_v58 }
 0x550   :  { %723 = vmatmul.mubr.bf16.vlgmr.msra.gmra.mxu0 %v578_v60 }
 0x551   :  { %732 = vmatprep.mubr.bf16.mxu0 %v1228_v1 }
 0x558   :  { %733 = vmatmul.mubr.bf16.gmra.mxu0 %v579_v61 }
 0x559   :  { %742 = vmatprep.mubr.bf16.mxu0 %v1228_v1 }
 0x560   :  { %743 = vmatmul.mubr.bf16.gmra.mxu0 %v580_v62 }
 0x561   :  { %752 = vmatprep.mubr.bf16.mxu0 %v1228_v1  ;;  %v1548_v1 = vrot.slane %v598_v19, %v606_v20 }
 0x5f0   :  { %v526_v63 = vpop.f32.mrf.mxu0 }
 0x5f1   :  { %v532_v5 = vadd.f32 %v526_v63, %v1417_v55 }
 0x5f2   :  { %v1047_v6 = vpop.f32.mrf.mxu0 }
 0x5f3   :  { %1130 = vtanh.f32 %v532_v5 }
 0x5f4   :  { %v529_v9 = vpop.f32.mrf.mxu0 }
 0x5f6   :  { %v1048_v10 = vpop.f32.mrf.mxu0 }
 0x600   :  { %v1131_v12 = vpop.eup %1130 }
 0x601   :  { %v534_v14 = vpack.c.bf16 %v1131_v12, %v1131_v12 }
 0x603   :  { %1066 = vmatmul.mubr.bf16.vlgmr.msra.gmra.mxu1 %v534_v14 }
 0x610   :  { %v724_v55 = vpop.f32.mrf.mxu0 }
 0x611   :  { %v725_v22 = vadd.f32 %v724_v55, %v1546_v21 }
 0x612   :  { %v726_v23 = vpop.f32.mrf.mxu0 }
 0x613   :  { %763 = vst [vmem:[#allocation7] sm:$0xff] %v725_v22  ;;  %v727_v24 = vadd.f32 %v726_v23, %v1548_v1 }
 0x614   :  { %v728_v25 = vpop.f32.mrf.mxu0 }
 0x615   :  { %764 = vst [vmem:[#allocation7 + $0x8] sm:$0xff] %v727_v24  ;;  %v729_v26 = vadd.f32 %v728_v25, %v1546_v21 }
 0x616   :  { %v730_v27 = vpop.f32.mrf.mxu0 }
 0x617   :  { %765 = vst [vmem:[#allocation7 + $0x10] sm:$0xff] %v729_v26  ;;  %v731_v28 = vadd.f32 %v730_v27, %v1548_v1 }
 0x618   :  { %v734_v29 = vpop.f32.mrf.mxu0 }
 0x619   :  { %766 = vst [vmem:[#allocation7 + $0x18] sm:$0xff] %v731_v28  ;;  %v735_v30 = vadd.f32 %v734_v29, %v1546_v21 }
 0x61a   :  { %v736_v31 = vpop.f32.mrf.mxu0 }
 0x61b   :  { %767 = vst [vmem:[#allocation7 + $0x20] sm:$0xff] %v735_v30  ;;  %v737_v32 = vadd.f32 %v736_v31, %v1548_v1 }
 0x61c   :  { %v738_v33 = vpop.f32.mrf.mxu0 }
 0x61d   :  { %768 = vst [vmem:[#allocation7 + $0x28] sm:$0xff] %v737_v32  ;;  %v739_v34 = vadd.f32 %v738_v33, %v1546_v21 }
 0x61e   :  { %v740_v35 = vpop.f32.mrf.mxu0 }
 0x61f   :  { %769 = vst [vmem:[#allocation7 + $0x30] sm:$0xff] %v739_v34  ;;  %v741_v36 = vadd.f32 %v740_v35, %v1548_v1 }
 0x620   :  { %v744_v37 = vpop.f32.mrf.mxu0 }
 0x621   :  { %770 = vst [vmem:[#allocation7 + $0x38] sm:$0xff] %v741_v36  ;;  %v745_v38 = vadd.f32 %v744_v37, %v1546_v21 }
 0x622   :  { %v746_v39 = vpop.f32.mrf.mxu0 }
 0x623   :  { %771 = vst [vmem:[#allocation7 + $0x40] sm:$0xff] %v745_v38  ;;  %v747_v40 = vadd.f32 %v746_v39, %v1548_v1 }
 0x624   :  { %v748_v41 = vpop.f32.mrf.mxu0 }
 0x625   :  { %772 = vst [vmem:[#allocation7 + $0x48] sm:$0xff] %v747_v40  ;;  %v749_v42 = vadd.f32 %v748_v41, %v1546_v21 }
 0x626   :  { %v750_v43 = vpop.f32.mrf.mxu0 }
 0x627   :  { %773 = vst [vmem:[#allocation7 + $0x50] sm:$0xff] %v749_v42  ;;  %v751_v2 = vadd.f32 %v750_v43, %v1548_v1 }
 0x629   :  { %774 = vst [vmem:[#allocation7 + $0x58] sm:$0xff] %v751_v2 }
 0x6c3   :  { %v569_v3 = vpop.f32.mrf.mxu1 }
 0x6c4   :  { %v575_v4 = vadd.f32 %v569_v3, %v1419_v59 }
 0x6c5   :  { %v1067_v7 = vpop.f32.mrf.mxu1 }
 0x6c6   :  { %1132 = vtanh.f32 %v575_v4 }
 0x6c7   :  { %v572_v8 = vpop.f32.mrf.mxu1 }
 0x6c9   :  { %v1068_v44 = vpop.f32.mrf.mxu1 }
 0x6d3   :  { %v1133_v45 = vpop.eup %1132 }
 0x6d4   :  { %577 = vst [vmem:[#allocation8] sm:$0xff] %v1133_v45  ;;  %v581_v46 = vpack.c.bf16 %v1133_v45, %v1131_v12 }
 0x6d6   :  { %753 = vmatmul.mubr.bf16.gmra.mxu0 %v581_v46 }
 0x6d7   :  { %1185 = shalt.err (!%p1182_p0)
}
 0x6d8   :  { %800 = dma.vmem_to_hbm [thread:$0]  %s798_s21, 128, %s1580_s7, [#allocation9]  }
 0x6d9   :  { %s1231_s25 = smov [#allocation7]  }
 0x6da   :  { %s784_s26 = sshll.u32 %s1231_s25, 4  ;;  %s785_s26 = int_to_ptr.vmem [resolvable:$true] %s784_s26 }
 0x6db   :  { %s1194_s7 = scalar_lea.vmem %s785_s26, 2048  ;;  %p1199_p2 = scmp.lt.s32.totalorder %s785_s26, %s785_s26 }
 0x6dc   :  { %p1195_p1 = scmp.ne.s32.totalorder %s785_s26, %s1194_s7  ;;  %p1200_p3 = scmp.lt.s32.totalorder %s1194_s7, %s1194_s7 }
 0x6de   :  { %p1201_p4 = por %p1200_p3, %p1199_p2 }
 0x6e0   :  { %p1202_p5 = pnand %p1201_p4, %p1195_p1 }
 0x796   :  { %v754_v59 = vpop.f32.mrf.mxu0 }
 0x797   :  { %v755_v11 = vadd.f32 %v754_v59, %v1546_v21 }
 0x798   :  { %v756_v47 = vpop.f32.mrf.mxu0 }
 0x799   :  { %775 = vst [vmem:[#allocation7 + $0x60] sm:$0xff] %v755_v11  ;;  %v757_v13 = vadd.f32 %v756_v47, %v1548_v1 }
 0x79a   :  { %v758_v0 = vpop.f32.mrf.mxu0 }
 0x79b   :  { %776 = vst [vmem:[#allocation7 + $0x68] sm:$0xff] %v757_v13  ;;  %v759_v15 = vadd.f32 %v758_v0, %v1546_v21 }
 0x79c   :  { %v760_v48 = vpop.f32.mrf.mxu0 }
 0x79d   :  { %777 = vst [vmem:[#allocation7 + $0x70] sm:$0xff] %v759_v15  ;;  %v761_v49 = vadd.f32 %v760_v48, %v1548_v1 }
 0x79f   :  { %778 = vst [vmem:[#allocation7 + $0x78] sm:$0xff] %v761_v49 }
 0x7a0   :  { %1205 = shalt.err (!%p1202_p5)
}
 0x7a1   :  { %s1232_s27 = smov 256   ;;  %s1233_s28 = smov 16  }
 0x7a2   :  { %790 = dma.vmem_to_hbm [thread:$0]  %s785_s26, 2048, %s1579_s6, [#allocation4], %s1232_s27, %s1232_s27, %s1233_s28  }
 0x7a3   :  { %1218 = dma.done.wait [#allocation4], 2048  }
 0x7a4   :  { %1219 = vsyncadd [#allocation4], 4294965248 }
 0x7a5   :  { %1220 = dma.done.wait [#allocation9], 128  }
 0x7a6   :  { %1221 = vsyncadd [#allocation9], 4294967168 }
 0x7a7   :  { %807 = vsyncpa [#allocation3], 1 }
 0x7a8   :  { %808 = vsyncpa [#allocation6], 1 }
 0x7a9   :  { %809 = vsyncpa [#allocation4], 1 }
 0x7aa   :  { %810 = vsyncpa [#allocation9], 1 }

</bundles_post_ra>
